<compile_context>
chip_gen: v5e
topology: v5e:2x2
jax: 0.10.0
libtpu: 0.0.40
codegen_flags: <defaults>
</compile_context>

<pallas_src>
import functools

import jax
import jax.numpy as jnp
from jax.experimental import pallas as pl
from jax.experimental.pallas import tpu as pltpu

LANES = 128
SUBLANES = 8
NCORES = 2            # outer "parallel" grid axis: feeds both TensorCores on v7x
MAX_TILE_ROWS = 2048  # (2048,128) f32 = 1 MiB per input per buffer


def _combo_kernel(x_ref, t_ref, o_ref, *, alpha, eps):
    i = pl.program_id(1)

    @pl.when(i == 0)
    def _init():
        o_ref[...] = jnp.zeros_like(o_ref)

    x = x_ref[...].astype(jnp.float32)
    t = t_ref[...].astype(jnp.float32)

    xc = jnp.clip(x, eps, 1.0 - eps)
    # Inner BCE term; the constant leading (-alpha) factor is applied once in
    # the wrapper, not per element.
    inner = t * jnp.log(xc) + (1.0 - alpha) * (1.0 - t) * jnp.log(1.0 - xc)

    rows = x.shape[0]
    r = rows // SUBLANES

    def fold(v):  # (rows, 128) -> (8, 128) partial sum: pure VPU adds, no XLU
        return v.reshape(r, SUBLANES, LANES).sum(axis=0)

    # Output block stays resident across the "arbitrary" axis -> accumulator.
    o_ref[0, 0] = o_ref[0, 0] + fold(x * t)   # intersection partial
    o_ref[0, 1] = o_ref[0, 1] + fold(x + t)   # sum(x) + sum(t) partial
    o_ref[0, 2] = o_ref[0, 2] + fold(inner)   # BCE inner-sum partial


def combo_loss(inputs, targets, ce_ratio=0.5, alpha=0.5, smooth=1.0, eps=1e-7):
    n = int(inputs.size)
    x = inputs.reshape(-1)     # native dtype; cast to f32 happens inside the kernel
    t = targets.reshape(-1)

    rows_total = -(-n // LANES)
    rows_per_core = -(-rows_total // NCORES)
    tile_rows = min(MAX_TILE_ROWS,
                    max(SUBLANES, -(-rows_per_core // SUBLANES) * SUBLANES))
    steps = -(-rows_per_core // tile_rows)
    padded_rows = NCORES * steps * tile_rows
    padded = padded_rows * LANES
    pad_count = padded - n
    if pad_count:  # pad only the small tail up to one block multiple
        x = jnp.pad(x, (0, pad_count))
        t = jnp.pad(t, (0, pad_count))
    x2 = x.reshape(padded_rows, LANES)
    t2 = t.reshape(padded_rows, LANES)

    kernel = functools.partial(_combo_kernel, alpha=float(alpha), eps=float(eps))

    partials = pl.pallas_call(
        kernel,
        out_shape=jax.ShapeDtypeStruct((NCORES, 3, SUBLANES, LANES), jnp.float32),
        grid_spec=pltpu.PrefetchScalarGridSpec(
            num_scalar_prefetch=0,
            grid=(NCORES, steps),
            in_specs=[
                pl.BlockSpec((tile_rows, LANES), lambda c, i: (c * steps + i, 0)),
                pl.BlockSpec((tile_rows, LANES), lambda c, i: (c * steps + i, 0)),
            ],
            out_specs=pl.BlockSpec((1, 3, SUBLANES, LANES),
                                   lambda c, i: (c, 0, 0, 0)),
        ),
        compiler_params=pltpu.CompilerParams(
            dimension_semantics=("parallel", "arbitrary")),
    )(x2, t2)

    # Tiny finalize in plain JAX: cross-lane reduce of the per-core accumulators
    # plus the scalar dice / mean / mix arithmetic.
    sums = jnp.sum(partials, axis=(0, 2, 3))          # -> (3,)
    s_xt, s_xpt, s_inner = sums[0], sums[1], sums[2]

    if pad_count:
        # Each zero-padded element (x = 0, t = 0) contributes exactly this
        # constant to the inner BCE sum (clamp maps 0 -> eps); remove it here
        # so the kernel needs no per-element validity mask.
        pad_x = jnp.float32(0.0)
        pad_t = jnp.float32(0.0)
        pad_xc = jnp.clip(pad_x, eps, 1.0 - eps)
        pad_inner = (pad_t * jnp.log(pad_xc)
                     + (1.0 - alpha) * (1.0 - pad_t) * jnp.log(1.0 - pad_xc))
        s_inner = s_inner - jnp.float32(pad_count) * pad_inner

    dice = (2.0 * s_xt + smooth) / (s_xpt + smooth)
    weighted_ce = (-alpha) * s_inner / n
    return ce_ratio * weighted_ce - (1.0 - ce_ratio) * dice


def _reference(inputs, targets, ce_ratio=0.5, alpha=0.5, smooth=1.0, eps=1e-7):
    x = inputs.reshape(-1).astype(jnp.float32)
    t = targets.reshape(-1).astype(jnp.float32)
    inter = jnp.sum(x * t)
    dice = (2.0 * inter + smooth) / (jnp.sum(x) + jnp.sum(t) + smooth)
    xc = jnp.clip(x, eps, 1.0 - eps)
    out = -(alpha * (t * jnp.log(xc) + (1.0 - alpha) * (1.0 - t) * jnp.log(1.0 - xc)))
    weighted_ce = jnp.mean(out)
    return ce_ratio * weighted_ce - (1.0 - ce_ratio) * dice


if __name__ == "__main__":
    key = jax.random.PRNGKey(0)
    k1, k2, k3, k4 = jax.random.split(key, 4)

    # Case 1: NCHW probabilities/masks, size is an exact (8,128) block multiple.
    inputs = jax.random.uniform(k1, (2, 4, 16, 16), dtype=jnp.float32)
    targets = (jax.random.uniform(k2, (2, 4, 16, 16)) > 0.5).astype(jnp.float32)
    loss = jax.block_until_ready(combo_loss(inputs, targets, ce_ratio=0.5,
                                            alpha=0.5, smooth=1.0))
    ref = _reference(inputs, targets, ce_ratio=0.5, alpha=0.5, smooth=1.0)
    assert jnp.allclose(loss, ref, rtol=1e-5, atol=1e-6), (loss, ref)

    # Case 2: odd-sized input -> exercises zero-pad + analytic BCE correction.
    inputs2 = jax.random.uniform(k3, (2, 3, 15, 17), dtype=jnp.float32)
    targets2 = (jax.random.uniform(k4, (2, 3, 15, 17)) > 0.5).astype(jnp.float32)
    loss2 = jax.block_until_ready(combo_loss(inputs2, targets2, ce_ratio=0.5,
                                             alpha=0.5, smooth=1.0))
    ref2 = _reference(inputs2, targets2, ce_ratio=0.5, alpha=0.5, smooth=1.0)
    assert jnp.allclose(loss2, ref2, rtol=1e-5, atol=1e-6), (loss2, ref2)

    print("KERNEL_OK")
</pallas_src>

<mosaic_0001>
module attributes {stable_mosaic.version = 11 : i64} {
  func.func @_combo_kernel(%arg0: i32, %arg1: i32, %arg2: memref<8x128xf32, #tpu.memory_space<vmem>>, %arg3: memref<8x128xf32, #tpu.memory_space<vmem>>, %arg4: memref<1x3x8x128xf32, #tpu.memory_space<vmem>>) attributes {dimension_semantics = [#tpu.dimension_semantics<parallel>, #tpu.dimension_semantics<arbitrary>], iteration_bounds = array<i64: 2, 1>, scalar_prefetch = 0 : i64, scratch_operands = 0 : i64, tpu.core_type = #tpu.core_type<tc>, window_params = [{transform_indices = @transform_0, window_bounds = array<i64: 8, 128>}, {transform_indices = @transform_1, window_bounds = array<i64: 8, 128>}, {transform_indices = @transform_2, window_bounds = array<i64: 1, 3, 8, 128>}]} {
    %c0_i32 = arith.constant 0 : i32
    %0 = arith.cmpi eq, %arg1, %c0_i32 : i32
    %1 = arith.extui %0 : i1 to i32
    %c0_i32_0 = arith.constant 0 : i32
    %2 = arith.cmpi ne, %1, %c0_i32_0 : i32
    scf.if %2 {
      %cst_33 = arith.constant 0.000000e+00 : f32
      %46 = vector.broadcast %cst_33 : f32 to vector<1x3x8x128xf32>
      %c0_34 = arith.constant 0 : index
      %c0_35 = arith.constant 0 : index
      %c0_36 = arith.constant 0 : index
      %c0_37 = arith.constant 0 : index
      %47 = vector.load %arg4[%c0_34, %c0_35, %c0_36, %c0_37] : memref<1x3x8x128xf32, #tpu.memory_space<vmem>>, vector<1x3x8x128xf32>
      tpu.vector_store %arg4[%c0_34, %c0_35, %c0_36, %c0_37], %46 {strides = array<i32>} : memref<1x3x8x128xf32, #tpu.memory_space<vmem>>, vector<1x3x8x128xf32>,
    } else {
    }
    %c0 = arith.constant 0 : index
    %c0_1 = arith.constant 0 : index
    %3 = vector.load %arg2[%c0, %c0_1] : memref<8x128xf32, #tpu.memory_space<vmem>>, vector<8x128xf32>
    %c0_2 = arith.constant 0 : index
    %c0_3 = arith.constant 0 : index
    %4 = vector.load %arg3[%c0_2, %c0_3] : memref<8x128xf32, #tpu.memory_space<vmem>>, vector<8x128xf32>
    %cst = arith.constant 1.000000e-07 : f32
    %cst_4 = arith.constant 0.99999988 : f32
    %5 = vector.broadcast %cst : f32 to vector<8x128xf32>
    %6 = arith.maximumf %5, %3 : vector<8x128xf32>
    %7 = vector.broadcast %cst_4 : f32 to vector<8x128xf32>
    %8 = arith.minimumf %7, %6 : vector<8x128xf32>
    %9 = math.log %8 : vector<8x128xf32>
    %10 = arith.mulf %4, %9 : vector<8x128xf32>
    %cst_5 = arith.constant 1.000000e+00 : f32
    %11 = vector.broadcast %cst_5 : f32 to vector<8x128xf32>
    %12 = arith.subf %11, %4 : vector<8x128xf32>
    %cst_6 = arith.constant 5.000000e-01 : f32
    %13 = vector.broadcast %cst_6 : f32 to vector<8x128xf32>
    %14 = arith.mulf %13, %12 : vector<8x128xf32>
    %cst_7 = arith.constant 1.000000e+00 : f32
    %15 = vector.broadcast %cst_7 : f32 to vector<8x128xf32>
    %16 = arith.subf %15, %8 : vector<8x128xf32>
    %17 = math.log %16 : vector<8x128xf32>
    %18 = arith.mulf %14, %17 : vector<8x128xf32>
    %19 = arith.addf %10, %18 : vector<8x128xf32>
    %c0_8 = arith.constant 0 : index
    %c0_9 = arith.constant 0 : index
    %c0_10 = arith.constant 0 : index
    %c0_11 = arith.constant 0 : index
    %20 = vector.load %arg4[%c0_8, %c0_9, %c0_10, %c0_11] : memref<1x3x8x128xf32, #tpu.memory_space<vmem>>, vector<1x1x8x128xf32>
    %21 = vector.shape_cast %20 : vector<1x1x8x128xf32> to vector<8x128xf32>
    %22 = arith.mulf %3, %4 : vector<8x128xf32>
    %23 = vector.shape_cast %22 : vector<8x128xf32> to vector<1x8x128xf32>
    %cst_12 = arith.constant dense<0.000000e+00> : vector<8x128xf32>
    %24 = vector.multi_reduction <add>, %23, %cst_12 [0] : vector<1x8x128xf32> to vector<8x128xf32>
    %25 = arith.addf %21, %24 : vector<8x128xf32>
    %c0_13 = arith.constant 0 : index
    %c0_14 = arith.constant 0 : index
    %c0_15 = arith.constant 0 : index
    %c0_16 = arith.constant 0 : index
    %26 = vector.load %arg4[%c0_13, %c0_14, %c0_15, %c0_16] : memref<1x3x8x128xf32, #tpu.memory_space<vmem>>, vector<1x1x8x128xf32>
    %27 = vector.shape_cast %26 : vector<1x1x8x128xf32> to vector<8x128xf32>
    %28 = vector.shape_cast %25 : vector<8x128xf32> to vector<1x1x8x128xf32>
    tpu.vector_store %arg4[%c0_13, %c0_14, %c0_15, %c0_16], %28 {strides = array<i32>} : memref<1x3x8x128xf32, #tpu.memory_space<vmem>>, vector<1x1x8x128xf32>,
    %c0_17 = arith.constant 0 : index
    %c1 = arith.constant 1 : index
    %c0_18 = arith.constant 0 : index
    %c0_19 = arith.constant 0 : index
    %29 = vector.load %arg4[%c0_17, %c1, %c0_18, %c0_19] : memref<1x3x8x128xf32, #tpu.memory_space<vmem>>, vector<1x1x8x128xf32>
    %30 = vector.shape_cast %29 : vector<1x1x8x128xf32> to vector<8x128xf32>
    %31 = arith.addf %3, %4 : vector<8x128xf32>
    %32 = vector.shape_cast %31 : vector<8x128xf32> to vector<1x8x128xf32>
    %cst_20 = arith.constant dense<0.000000e+00> : vector<8x128xf32>
    %33 = vector.multi_reduction <add>, %32, %cst_20 [0] : vector<1x8x128xf32> to vector<8x128xf32>
    %34 = arith.addf %30, %33 : vector<8x128xf32>
    %c0_21 = arith.constant 0 : index
    %c1_22 = arith.constant 1 : index
    %c0_23 = arith.constant 0 : index
    %c0_24 = arith.constant 0 : index
    %35 = vector.load %arg4[%c0_21, %c1_22, %c0_23, %c0_24] : memref<1x3x8x128xf32, #tpu.memory_space<vmem>>, vector<1x1x8x128xf32>
    %36 = vector.shape_cast %35 : vector<1x1x8x128xf32> to vector<8x128xf32>
    %37 = vector.shape_cast %34 : vector<8x128xf32> to vector<1x1x8x128xf32>
    tpu.vector_store %arg4[%c0_21, %c1_22, %c0_23, %c0_24], %37 {strides = array<i32>} : memref<1x3x8x128xf32, #tpu.memory_space<vmem>>, vector<1x1x8x128xf32>,
    %c0_25 = arith.constant 0 : index
    %c2 = arith.constant 2 : index
    %c0_26 = arith.constant 0 : index
    %c0_27 = arith.constant 0 : index
    %38 = vector.load %arg4[%c0_25, %c2, %c0_26, %c0_27] : memref<1x3x8x128xf32, #tpu.memory_space<vmem>>, vector<1x1x8x128xf32>
    %39 = vector.shape_cast %38 : vector<1x1x8x128xf32> to vector<8x128xf32>
    %40 = vector.shape_cast %19 : vector<8x128xf32> to vector<1x8x128xf32>
    %cst_28 = arith.constant dense<0.000000e+00> : vector<8x128xf32>
    %41 = vector.multi_reduction <add>, %40, %cst_28 [0] : vector<1x8x128xf32> to vector<8x128xf32>
    %42 = arith.addf %39, %41 : vector<8x128xf32>
    %c0_29 = arith.constant 0 : index
    %c2_30 = arith.constant 2 : index
    %c0_31 = arith.constant 0 : index
    %c0_32 = arith.constant 0 : index
    %43 = vector.load %arg4[%c0_29, %c2_30, %c0_31, %c0_32] : memref<1x3x8x128xf32, #tpu.memory_space<vmem>>, vector<1x1x8x128xf32>
    %44 = vector.shape_cast %43 : vector<1x1x8x128xf32> to vector<8x128xf32>
    %45 = vector.shape_cast %42 : vector<8x128xf32> to vector<1x1x8x128xf32>
    tpu.vector_store %arg4[%c0_29, %c2_30, %c0_31, %c0_32], %45 {strides = array<i32>} : memref<1x3x8x128xf32, #tpu.memory_space<vmem>>, vector<1x1x8x128xf32>,
    return
  }
  func.func @transform_0(%arg0: i32, %arg1: i32) -> (i32, i32) {
    %c1_i32 = arith.constant 1 : i32
    %0 = arith.muli %arg0, %c1_i32 : i32
    %1 = arith.addi %0, %arg1 : i32
    %c0_i32 = arith.constant 0 : i32
    %c0_i32_0 = arith.constant 0 : i32
    return %1, %c0_i32 : i32, i32
  }
  func.func @transform_1(%arg0: i32, %arg1: i32) -> (i32, i32) {
    %c1_i32 = arith.constant 1 : i32
    %0 = arith.muli %arg0, %c1_i32 : i32
    %1 = arith.addi %0, %arg1 : i32
    %c0_i32 = arith.constant 0 : i32
    %c0_i32_0 = arith.constant 0 : i32
    return %1, %c0_i32 : i32, i32
  }
  func.func @transform_2(%arg0: i32, %arg1: i32) -> (i32, i32, i32, i32) {
    %c0_i32 = arith.constant 0 : i32
    %c0_i32_0 = arith.constant 0 : i32
    %c0_i32_1 = arith.constant 0 : i32
    %c0_i32_2 = arith.constant 0 : i32
    return %arg0, %c0_i32, %c0_i32_0, %c0_i32_1 : i32, i32, i32, i32
  }
}

</mosaic_0001>

<bundles_post_ra>
// kernel: tpu_custom_call.1
= control target key start
LH: loop header
LB: loop body
LE: loop exit
PB: predicated region body
PF: predicated region fallthrough
CT: control target
= control target key end

     0   :  { %7 = vsyncpa [#allocation3], 0  ;;  %s767_s0 = inlined_call_operand.hbm [shape: f32[16,128], index: 0, kind: input, shape index: {}]   ;;  %s768_s1 = inlined_call_operand.hbm [shape: f32[16,128], index: 1, kind: input, shape index: {}]   ;;  %s769_s2 = inlined_call_operand.hbm [shape: f32[2,3,8,128], index: 2, kind: output, shape index: {}]  }
   0x1   :  { %9 = vsyncpa [#allocation3 + $0x1], 0 }
   0x2   :  { %10 = vsyncpa [#allocation6], 0 }
   0x3   :  { %12 = vsyncpa [#allocation6 + $0x1], 0 }
   0x4   :  { %13 = vsyncpa [#allocation4], 0 }
   0x5   :  { %15 = vsyncpa [#allocation4 + $0x1], 0  ;;  %s638_s9 = smov 0   ;;  %s640_s10 = smov 0  }
   0x6   :  { %s642_s11 = smov 0   ;;  %s644_s12 = smov 0  }
   0x7   :  { %s646_s13 = smov 0   ;;  %s648_s14 = smov 0  }
   0x8 LB: > { %s379_s15 = sadd.s32 4294967295, %s619_s14   ;;  %s380_s16 = sadd.s32 4294967294, %s619_s14   ;;  %s619_s14 = sphi %s648_s14, %s21_s14   ;;  %s615_s13 = sphi %s646_s13, %s778_s13   ;;  %s611_s12 = sphi %s644_s12, %s777_s12   ;;  %s607_s11 = sphi %s642_s11, %s776_s11   ;;  %s603_s10 = sphi %s640_s10, %s775_s10   ;;  %s599_s9 = sphi %s638_s9, %s774_s9  }
   0x9   : > { %s33_s17 = sadd.s32 1, %s615_s13  ;;  %s42_s18 = sadd.s32 1, %s607_s11 }
   0xa   : > { %p35_p0 = scmp.ge.s32.totalorder %s33_s17, 2  ;;  %p49_p1 = scmp.ne.s32.totalorder %s607_s11, %s603_s10 }
   0xb   : > { %p50_p2 = scmp.eq.s32.totalorder %s619_s14, 0  ;;  %p55_p3 = scmp.ne.s32.totalorder %s603_s10, %s599_s9 }
   0xc   : > { %s780_s17 = smov (%p35_p0, %s33_s17), 0  ;;  %p56_p5 = scmp.eq.s32.totalorder %s379_s15, 0 }
   0xd   : > { %p679_p4 = por %p50_p2, %p49_p1  ;;  %s39_s20 = ssub.s32 %s615_s13, %s780_s17 }
   0xe   : > { %p107_p6 = scmp.eq.s32.totalorder %s379_s15, 1  ;;  %p40_p7 = scmp.eq.s32.totalorder %s39_s20, 0 }
   0xf   : > { %p685_p8 = por %p56_p5, %p55_p3  ;;  %p113_p10 = scmp.eq.s32.totalorder %s380_s16, 1 }
  0x10   : > { %p689_p9 = por %p107_p6, %p49_p1  ;;  %p382_p12 = scmp.ge.s32.totalorder %s619_s14, 2 }
  0x11   : > { %s694_s23 = scalar_select %p40_p7, %s607_s11, %s42_s18  }
  0x12   : > { %p696_p11 = por %p113_p10, %p55_p3  ;;  %p416_p13 = scmp.lt.s32.totalorder %s619_s14, 2 }
  0x13   : > { %s133_s25 = sand.u32 1, %s607_s11   ;;  %s384_s27 = sshll.u32 %s615_s13, 3 }
  0x14   : > { %s383_s26 = sshll.u32 %s133_s25, 3  ;;  %s142_s30 = scalar_lea.hbm %s767_s0, %s384_s27 }
  0x15   : > { %s137_s3 = scalar_lea.vmem [#allocation2], %s383_s26  ;;  %s144_s5 = sshll.u32 %s142_s30, 4  ;;  %s145_s5 = int_to_ptr.hbm [resolvable:$true] %s144_s5 }
  0x16   : > { %s146_s4 = sshll.u32 %s137_s3, 4  ;;  %p406_p0 = pnand %p416_p13, %p679_p4  ;;  %s147_s4 = int_to_ptr.vmem [resolvable:$true] %s146_s4 }
  0x17   : > { %p387_p1 = scmp.ge.s32.totalorder %s619_s14, 1  ;;  %p171_p2 = scmp.lt.s32.totalorder %s619_s14, 3 }
  0x18   : > { %s134_s6 = scalar_lea.sflag [#allocation3], %s133_s25  ;;  %s162_s15 = scalar_lea.hbm %s768_s1, %s384_s27 }
  0x19   : > { %408 = dma.hbm_to_vmem [thread:$0]  (!%p406_p0), %s145_s5, 128, %s147_s4, %s134_s6  }
  0x1a   : > { %p172_p3 = pnand %p387_p1, %p171_p2  ;;  %s157_s16 = scalar_lea.vmem [#allocation5], %s383_s26 }
  0x1b   : > { %s166_s18 = sshll.u32 %s157_s16, 4  ;;  %s164_s20 = sshll.u32 %s162_s15, 4  ;;  %s167_s18 = int_to_ptr.vmem [resolvable:$true] %s166_s18  ;;  %s165_s20 = int_to_ptr.hbm [resolvable:$true] %s164_s20 }
  0x1c   : > { %s154_s28 = scalar_lea.sflag [#allocation6], %s133_s25  ;;  %175 = sbr.rel (%p172_p3) target bundleno = 60 (0x3c), region = 28 }
  0x1d   : > { %411 = dma.hbm_to_vmem [thread:$0]  (!%p406_p0), %s165_s20, 128, %s167_s18, %s154_s28  }
  0x1e   : > { %s715_s19 = sand.u32 (!%p172_p3), 1, %s603_s10  }
  0x1f   : > { %s388_s29 = sshll.u32 (!%p172_p3), %s715_s19, 3  ;;  %s178_s30 = scalar_lea.sflag (!%p172_p3), [#allocation3], %s715_s19 }
  0x20   : > { %s181_s3 = scalar_lea.vmem (!%p172_p3), [#allocation2], %s388_s29 }
  0x21   : > { %586 = dma.done.wait (%p685_p8), %s178_s30, 128  }
  0x22   : > { %588 = vsyncadd (%p685_p8), %s178_s30, 4294967168  ;;  %s188_s26 = scalar_lea.sflag [#allocation6], %s715_s19  ;;  %s191_s25 = scalar_lea.vmem [#allocation5], %s388_s29 }
  0x23   : > { %590 = dma.done.wait (%p685_p8), %s188_s26, 128  }
  0x24   : > { %592 = vsyncadd (%p685_p8), %s188_s26, 4294967168  ;;  %s397_s27 = smul.u32 24, %s715_s19  ;;  %v227_v0 = vld [vmem:[%s181_s3] sm:$0xff]  ;;  %v228_v1 = vld [vmem:[%s191_s25] sm:$0xff]  ;;  %s258_s16 = scalar_lea.sflag [#allocation4], %s715_s19 }
  0x25   : > { %v229_v2 = vmax.f32 %v227_v0, 1e-07  ;;  %v242_v3 = vmul.f32 %v228_v1, %v227_v0  ;;  %v248_v4 = vadd.f32 %v228_v1, %v227_v0  ;;  %v234_v7 = vsub.f32 1.0, %v228_v1  ;;  %s398_s5 = smul.u32 24, %s611_s12  ;;  %s553_s29 = scalar_lea.hbm %s769_s2, 48 }
  0x26   : > { %s217_s4 = scalar_lea.vmem [#allocation7], %s397_s27 }
  0x27   : > { %v230_v5 = vmin.f32 %v229_v2, 0.9999999  ;;  %245 = vst [vmem:[%s217_s4] sm:$0xff] %v242_v3  ;;  %v235_v10 = vmul.f32 0.5, %v234_v7  ;;  %s269_s7 = scalar_lea.hbm %s769_s2, %s398_s5  ;;  %s270_s8 = sshll.u32 %s217_s4, 4  ;;  %s271_s8 = int_to_ptr.vmem [resolvable:$true] %s270_s8 }
  0x28   : > { %391 = vst [vmem:[%s217_s4 + $0x8] sm:$0xff] %v248_v4  ;;  %s272_s15 = sshll.u32 %s269_s7, 4  ;;  %s273_s15 = int_to_ptr.hbm [resolvable:$true] %s272_s15 }
  0x29   : > { %469 = vlog2.f32 %v230_v5  ;;  %v236_v6 = vsub.f32 1.0, %v230_v5  ;;  %s547_s12 = sshra.s32 %s273_s15, 4  ;;  %s548_s12 = int_to_ptr.hbm [resolvable:$true] %s547_s12 }
  0x2a   : > { %s549_s18 = scalar_lea.hbm %s548_s12, 24  ;;  %p554_p7 = scmp.lt.s32.totalorder %s548_s12, %s769_s2 }
  0x2b   : > { %471 = vlog2.f32 %v236_v6  ;;  %p550_p4 = scmp.ne.s32.totalorder %s548_s12, %s549_s18  ;;  %p555_p8 = scmp.lt.s32.totalorder %s553_s29, %s549_s18 }
  0x2d   : > { %p551_p5 = pnand %p550_p4, %p689_p9  ;;  %p556_p10 = por %p555_p8, %p554_p7 }
  0x2f   : > { %v470_v8 = vpop.eup %469  ;;  %p552_p6 = pneg %p551_p5 }
  0x30   : > { %v232_v9 = vmul.f32 0.6931472, %v470_v8 }
  0x31   : > { %v472_v11 = vpop.eup %471  ;;  %p557_p13 = pnand %p556_p10, %p552_p6 }
  0x32   : > { %v233_v12 = vmul.f32 %v232_v9, %v228_v1  ;;  %v238_v13 = vmul.f32 0.6931472, %v472_v11 }
  0x34   : > { %v239_v14 = vmul.f32 %v238_v13, %v235_v10 }
  0x36   : > { %v240_v15 = vadd.f32 %v239_v14, %v233_v12 }
  0x38   : > { %393 = vst [vmem:[%s217_s4 + $0x10] sm:$0xff] %v240_v15 }
  0x39   : > { %560 = shalt.err (!%p557_p13)
}
  0x3a   : > { %s621_s19 = smov 128   ;;  %s622_s26 = smov 8  }
  0x3b   : > { %403 = dma.vmem_to_hbm [thread:$0]  (%p689_p9), %s271_s8, 384, %s273_s15, %s258_s16, %s621_s19, %s621_s19, %s622_s26  }
  0x3c PF: > { %s287_s25 = sand.u32 1, %s599_s9   ;;  %p413_p0 = pnand %p382_p12, %p696_p11 }
  0x3d   : > { %s288_s27 = scalar_lea.sflag [#allocation4], %s287_s25 }
  0x3e   : > { %p414_p1 = pneg %p413_p0 }
  0x40   : > { %594 = dma.done.wait (%p414_p1), %s288_s27, 384  }
  0x41   : > { %596 = vsyncadd (%p414_p1), %s288_s27, 4294966912  ;;  %s21_s14 = sadd.s32 1, %s619_s14   ;;  %s774_s9 = smov %s603_s10 }
  0x42   : > { %p18_p2 = scmp.ge.s32.totalorder %s21_s14, 4   ;;  %s775_s10 = smov %s607_s11 }
  0x43   : > { %s776_s11 = smov %s694_s23  ;;  %s777_s12 = smov %s615_s13 }
  0x44   : > { %s778_s13 = smov %s780_s17  ;;  %20 = sbr.rel (!%p18_p2) target bundleno = 8 (0x8), region = 92 }
  0x49   :  { %294 = vsyncpa [#allocation3], 1 }
  0x4a   :  { %296 = vsyncpa [#allocation3 + $0x1], 1 }
  0x4b   :  { %297 = vsyncpa [#allocation6], 1 }
  0x4c   :  { %299 = vsyncpa [#allocation6 + $0x1], 1 }
  0x4d   :  { %300 = vsyncpa [#allocation4], 1 }
  0x4e   :  { %302 = vsyncpa [#allocation4 + $0x1], 1 }

</bundles_post_ra>
